<compile_context>
chip_gen: v6e
topology: v6e:2x2x1
jax: 0.10.0
libtpu: 0.0.40
codegen_flags: <defaults>
</compile_context>

<pallas_src>
import functools

import jax
import jax.numpy as jnp
import numpy as np
from jax.experimental import pallas as pl
from jax.experimental.pallas import tpu as pltpu


def _initial_block_kernel(x_ref, w_ref, b_ref, am_ref, as_ref, o_ref, *,
                          cin, cout, pitch, tile_h):
    """One (batch, row-tile) grid step.

    x_ref  : (1, 1, 4*cin, (tile_h+2)*pitch)  parity-split padded planes (incl. 2 halo rows)
    w_ref  : (cout, 9*cin)   BN-folded conv weight, columns grouped by (hoff, woff)
    b_ref  : (cout, 1)       BN-folded bias
    am_ref : (cout, 1)       PReLU slopes for conv channels
    as_ref : (cin, 1)        PReLU slopes for pool channels
    o_ref  : (1, cout+cin, tile_h*pitch)      lane dim is a multiple of 128
    """
    L = tile_h * pitch
    x = x_ref[0, 0]                                   # (4*cin, (tile_h+2)*pitch)
    w = w_ref[...]

    def tap(plane, hoff, woff, nplanes=1):
        # plane index p = 2*ph + pw; offsets are static, hoff*pitch is lane-aligned.
        off = hoff * pitch + woff
        return x[plane * cin:(plane + nplanes) * cin, off:off + L]

    # --- conv 3x3 stride 2: sum of per-offset dots, f32 accumulate on the MXU ---
    # (hoff,woff)=(0,0): planes 0..3  -> one contiguous 12-row slice
    acc = jnp.dot(w[:, 0:4 * cin], tap(0, 0, 0, nplanes=4),
                  preferred_element_type=jnp.float32)
    # (1,0): planes 0..1 -> contiguous 6-row slice at lane-aligned offset pitch
    acc += jnp.dot(w[:, 4 * cin:6 * cin], tap(0, 1, 0, nplanes=2),
                   preferred_element_type=jnp.float32)
    # (0,1): plane 0 and plane 2 (1-lane shift each)
    acc += jnp.dot(w[:, 6 * cin:7 * cin], tap(0, 0, 1),
                   preferred_element_type=jnp.float32)
    acc += jnp.dot(w[:, 7 * cin:8 * cin], tap(2, 0, 1),
                   preferred_element_type=jnp.float32)
    # (1,1): plane 0
    acc += jnp.dot(w[:, 8 * cin:9 * cin], tap(0, 1, 1),
                   preferred_element_type=jnp.float32)
    main = acc + b_ref[...]                           # (cout, L) f32

    # --- maxpool 2x2 stride 2 (taps shifted by +1 because of the conv padding) ---
    side = tap(3, 0, 0)
    side = jnp.maximum(side, tap(2, 0, 1))
    side = jnp.maximum(side, tap(1, 1, 0))
    side = jnp.maximum(side, tap(0, 1, 1))            # (cin, L)
    side = side.astype(jnp.float32)

    # --- per-channel PReLU on each part + two direct stores (no channel concat) ---
    o_ref[0, :cout, :] = jnp.where(main > 0, main, main * am_ref[...]).astype(o_ref.dtype)
    o_ref[0, cout:, :] = jnp.where(side > 0, side, side * as_ref[...]).astype(o_ref.dtype)


def initial_block_forward(x_nchw, params, *, tile_h=None, compute_dtype=jnp.float32):
    N, Cin, H, W = x_nchw.shape
    assert H % 2 == 0 and W % 2 == 0, "InitialBlock layout requires even H and W"
    Ho, Wo = H // 2, W // 2
    Cout = params["conv_w"].shape[0]
    Ccat = Cout + Cin

    # Row pitch: >= Wo+2 (conv reach + guard) and a multiple of 128 so every
    # hoff*pitch tap offset and every output tile length is lane-aligned.
    pitch = ((Wo + 2 + 127) // 128) * 128

    in_item = jnp.dtype(compute_dtype).itemsize
    if tile_h is None:
        # Largest divisor of Ho whose double-buffered (input + output) blocks
        # fit a conservative VMEM budget (safe for v7x's 64 MiB).
        budget = 24 << 20
        tile_h = 1
        for t in range(1, Ho + 1):
            if Ho % t:
                continue
            in_b = 4 * Cin * (t + 2) * pitch * in_item
            out_b = Ccat * t * pitch * 4
            if 2 * (in_b + out_b) <= budget:
                tile_h = t
    assert Ho % tile_h == 0, "tile_h must divide Ho"
    num_tiles = Ho // tile_h
    L_tile = tile_h * pitch
    plane_tile = (tile_h + 2) * pitch

    x = x_nchw.astype(jnp.float32)

    # Zero-pad (conv padding=1 top/left, guard rows/cols bottom/right) and split
    # into 2x2 parity planes, channel-major:
    #   x_planes[n, (2*ph+pw)*Cin + c, i, j] = x_pad[n, c, 2*i + ph, 2*j + pw]
    xp = jnp.pad(x, ((0, 0), (0, 0),
                     (1, 2 * (Ho + 2) - H - 1),
                     (1, 2 * pitch - W - 1)))
    xp = xp.reshape(N, Cin, Ho + 2, 2, pitch, 2)
    x_planes = jnp.transpose(xp, (0, 3, 5, 1, 2, 4)).reshape(N, 4 * Cin, Ho + 2, pitch)

    # Per-row-tile blocks with a 2-row halo so plain BlockSpecs tile Ho over the
    # grid (duplication overhead ~ 2/tile_h of the input bytes).
    row_idx = jnp.arange(num_tiles)[:, None] * tile_h + jnp.arange(tile_h + 2)[None, :]
    x_tiles = x_planes[:, :, row_idx, :]                         # (N, 4Cin, nt, th+2, pitch)
    x_tiles = jnp.transpose(x_tiles, (0, 2, 1, 3, 4))
    x_tiles = x_tiles.reshape(N, num_tiles, 4 * Cin, plane_tile).astype(compute_dtype)

    # Fold BatchNorm (inference, running stats) into the conv weight/bias, and
    # group the weight columns to match the kernel's per-offset tap order.
    eps = 1e-5
    scale = params["bn_gamma"] * jax.lax.rsqrt(params["bn_var"] + eps)
    w_f = params["conv_w"] * scale[:, None, None, None]          # (Cout, Cin, 3, 3)
    b_f = (params["conv_b"] - params["bn_mean"]) * scale + params["bn_beta"]

    def tapcols(kh, kw):
        return w_f[:, :, kh, kw]                                 # (Cout, Cin)

    w_mat = jnp.concatenate(
        [tapcols(0, 0), tapcols(0, 1), tapcols(1, 0), tapcols(1, 1),   # (hoff,woff)=(0,0)
         tapcols(2, 0), tapcols(2, 1),                                 # (1,0)
         tapcols(0, 2),                                                # (0,1) plane 0
         tapcols(1, 2),                                                # (0,1) plane 2
         tapcols(2, 2)],                                               # (1,1) plane 0
        axis=1).astype(compute_dtype)                                  # (Cout, 9*Cin)
    b_col = b_f.reshape(Cout, 1).astype(jnp.float32)
    a_main = params["prelu_alpha"][:Cout].reshape(Cout, 1).astype(jnp.float32)
    a_side = params["prelu_alpha"][Cout:].reshape(Cin, 1).astype(jnp.float32)

    kernel = functools.partial(_initial_block_kernel,
                               cin=Cin, cout=Cout, pitch=pitch, tile_h=tile_h)

    in_block_bytes = 4 * Cin * plane_tile * in_item
    out_block_bytes = Ccat * L_tile * 4
    vmem_limit = int(min(64 << 20,
                         max(8 << 20, 3 * (in_block_bytes + out_block_bytes) + (4 << 20))))

    cost = pl.CostEstimate(
        flops=2 * N * Ho * Wo * Cout * 9 * Cin + 5 * N * Ccat * Ho * Wo,
        transcendentals=0,
        bytes_accessed=int(x_tiles.size * jnp.dtype(compute_dtype).itemsize
                           + w_mat.size * jnp.dtype(compute_dtype).itemsize
                           + N * Ccat * Ho * pitch * 4))

    out = pl.pallas_call(
        kernel,
        out_shape=jax.ShapeDtypeStruct((N, Ccat, Ho * pitch), jnp.float32),
        grid_spec=pltpu.PrefetchScalarGridSpec(
            num_scalar_prefetch=0,
            grid=(N, num_tiles),
            in_specs=[
                pl.BlockSpec((1, 1, 4 * Cin, plane_tile), lambda n, t: (n, t, 0, 0)),
                pl.BlockSpec((Cout, 9 * Cin), lambda n, t: (0, 0)),
                pl.BlockSpec((Cout, 1), lambda n, t: (0, 0)),
                pl.BlockSpec((Cout, 1), lambda n, t: (0, 0)),
                pl.BlockSpec((Cin, 1), lambda n, t: (0, 0)),
            ],
            out_specs=pl.BlockSpec((1, Ccat, L_tile), lambda n, t: (n, 0, t)),
        ),
        compiler_params=pltpu.CompilerParams(
            dimension_semantics=("parallel", "parallel"),
            vmem_limit_bytes=vmem_limit),
        cost_estimate=cost,
    )(x_tiles, w_mat, b_col, a_main, a_side)

    # Drop the pitch-padding garbage columns; result is already NCHW-ordered.
    return out.reshape(N, Ccat, Ho, pitch)[:, :, :, :Wo]


def reference_forward(x, params):
    """Pure-JAX reference for verification."""
    main = jax.lax.conv_general_dilated(
        x, params["conv_w"], window_strides=(2, 2),
        padding=((1, 1), (1, 1)),
        dimension_numbers=("NCHW", "OIHW", "NCHW"))
    main = main + params["conv_b"].reshape(1, -1, 1, 1)
    inv = jax.lax.rsqrt(params["bn_var"].reshape(1, -1, 1, 1) + 1e-5)
    main = (main - params["bn_mean"].reshape(1, -1, 1, 1)) * inv \
           * params["bn_gamma"].reshape(1, -1, 1, 1) + params["bn_beta"].reshape(1, -1, 1, 1)
    side = jax.lax.reduce_window(x, -jnp.inf, jax.lax.max,
                                 (1, 1, 2, 2), (1, 1, 2, 2), "VALID")
    cat = jnp.concatenate([main, side], axis=1)
    alpha = params["prelu_alpha"].reshape(1, -1, 1, 1)
    return jnp.where(cat > 0, cat, cat * alpha)


if __name__ == "__main__":
    key = jax.random.PRNGKey(0)
    kx, kw, kb, kg, kbe, km, kv = jax.random.split(key, 7)

    N, Cin, H, W = 2, 3, 16, 16
    Cout = 13

    x = jax.random.normal(kx, (N, Cin, H, W), dtype=jnp.float32)

    params = {
        "conv_w":     0.1 * jax.random.normal(kw, (Cout, Cin, 3, 3), jnp.float32),
        "conv_b":     0.1 * jax.random.normal(kb, (Cout,), jnp.float32),
        "bn_gamma":   1.0 + 0.1 * jax.random.normal(kg, (Cout,), jnp.float32),
        "bn_beta":    0.1 * jax.random.normal(kbe, (Cout,), jnp.float32),
        "bn_mean":    0.1 * jax.random.normal(km, (Cout,), jnp.float32),
        "bn_var":     1.0 + 0.5 * jnp.abs(jax.random.normal(kv, (Cout,), jnp.float32)),
        # PyTorch nn.PReLU(16) default init: 0.25 per channel
        "prelu_alpha": jnp.full((Cout + Cin,), 0.25, jnp.float32),
    }

    ref = reference_forward(x, params)

    # f32 path with explicit row tiling (2 row tiles per image -> grid (2, 2), all parallel).
    fwd_f32 = jax.jit(functools.partial(initial_block_forward, tile_h=4))
    out_f32 = jax.block_until_ready(fwd_f32(x, params))
    np.testing.assert_allclose(np.asarray(out_f32), np.asarray(ref), rtol=1e-4, atol=1e-4)

    # bf16 DMA/MXU path (v6e/v7x bandwidth optimization); f32 accumulate, looser tolerance.
    fwd_bf16 = jax.jit(functools.partial(initial_block_forward, compute_dtype=jnp.bfloat16))
    out_bf16 = jax.block_until_ready(fwd_bf16(x, params))
    np.testing.assert_allclose(np.asarray(out_bf16), np.asarray(ref), rtol=3e-2, atol=3e-2)

    print("KERNEL_OK")
</pallas_src>

<mosaic_0001>
module attributes {stable_mosaic.version = 11 : i64} {
  func.func @_initial_block_kernel(%arg0: i32, %arg1: i32, %arg2: memref<1x1x12x768xf32, #tpu.memory_space<vmem>>, %arg3: memref<13x27xf32, #tpu.memory_space<vmem>>, %arg4: memref<13x1xf32, #tpu.memory_space<vmem>>, %arg5: memref<13x1xf32, #tpu.memory_space<vmem>>, %arg6: memref<3x1xf32, #tpu.memory_space<vmem>>, %arg7: memref<1x16x512xf32, #tpu.memory_space<vmem>>) attributes {dimension_semantics = [#tpu.dimension_semantics<parallel>, #tpu.dimension_semantics<parallel>], iteration_bounds = array<i64: 2, 2>, scalar_prefetch = 0 : i64, scratch_operands = 0 : i64, tpu.core_type = #tpu.core_type<tc>, window_params = [{transform_indices = @transform_0, window_bounds = array<i64: 1, 1, 12, 768>}, {pipeline_mode = #tpu.pipeline_mode<synchronous>, transform_indices = @transform_1, window_bounds = array<i64: 13, 27>}, {pipeline_mode = #tpu.pipeline_mode<synchronous>, transform_indices = @transform_2, window_bounds = array<i64: 13, 1>}, {pipeline_mode = #tpu.pipeline_mode<synchronous>, transform_indices = @transform_3, window_bounds = array<i64: 13, 1>}, {pipeline_mode = #tpu.pipeline_mode<synchronous>, transform_indices = @transform_4, window_bounds = array<i64: 3, 1>}, {transform_indices = @transform_5, window_bounds = array<i64: 1, 16, 512>}]} {
    %c0 = arith.constant 0 : index
    %c0_0 = arith.constant 0 : index
    %c0_1 = arith.constant 0 : index
    %c0_2 = arith.constant 0 : index
    %0 = vector.load %arg2[%c0, %c0_0, %c0_1, %c0_2] : memref<1x1x12x768xf32, #tpu.memory_space<vmem>>, vector<1x1x12x768xf32>
    %1 = vector.shape_cast %0 : vector<1x1x12x768xf32> to vector<12x768xf32>
    %c0_3 = arith.constant 0 : index
    %c0_4 = arith.constant 0 : index
    %2 = vector.load %arg3[%c0_3, %c0_4] : memref<13x27xf32, #tpu.memory_space<vmem>>, vector<13x27xf32>
    %3 = vector.extract_strided_slice %2 {offsets = [0, 0], sizes = [13, 12], strides = [1, 1]} : vector<13x27xf32> to vector<13x12xf32>
    %4 = vector.extract_strided_slice %1 {offsets = [0, 0], sizes = [12, 512], strides = [1, 1]} : vector<12x768xf32> to vector<12x512xf32>
    %cst = arith.constant dense<0.000000e+00> : vector<13x512xf32>
    %5 = tpu.matmul %3, %4, %cst {dimension_numbers = #tpu.dot_dimension_numbers<[1], [0], [0], [1], [0, 0, 1, 1], [], []>} : vector<13x12xf32>, vector<12x512xf32>, vector<13x512xf32> -> vector<13x512xf32>
    %6 = vector.extract_strided_slice %2 {offsets = [0, 12], sizes = [13, 6], strides = [1, 1]} : vector<13x27xf32> to vector<13x6xf32>
    %7 = vector.extract_strided_slice %1 {offsets = [0, 128], sizes = [6, 512], strides = [1, 1]} : vector<12x768xf32> to vector<6x512xf32>
    %cst_5 = arith.constant dense<0.000000e+00> : vector<13x512xf32>
    %8 = tpu.matmul %6, %7, %cst_5 {dimension_numbers = #tpu.dot_dimension_numbers<[1], [0], [0], [1], [0, 0, 1, 1], [], []>} : vector<13x6xf32>, vector<6x512xf32>, vector<13x512xf32> -> vector<13x512xf32>
    %9 = arith.addf %5, %8 : vector<13x512xf32>
    %10 = vector.extract_strided_slice %2 {offsets = [0, 18], sizes = [13, 3], strides = [1, 1]} : vector<13x27xf32> to vector<13x3xf32>
    %11 = vector.extract_strided_slice %1 {offsets = [0, 1], sizes = [3, 512], strides = [1, 1]} : vector<12x768xf32> to vector<3x512xf32>
    %cst_6 = arith.constant dense<0.000000e+00> : vector<13x512xf32>
    %12 = tpu.matmul %10, %11, %cst_6 {dimension_numbers = #tpu.dot_dimension_numbers<[1], [0], [0], [1], [0, 0, 1, 1], [], []>} : vector<13x3xf32>, vector<3x512xf32>, vector<13x512xf32> -> vector<13x512xf32>
    %13 = arith.addf %9, %12 : vector<13x512xf32>
    %14 = vector.extract_strided_slice %2 {offsets = [0, 21], sizes = [13, 3], strides = [1, 1]} : vector<13x27xf32> to vector<13x3xf32>
    %15 = vector.extract_strided_slice %1 {offsets = [6, 1], sizes = [3, 512], strides = [1, 1]} : vector<12x768xf32> to vector<3x512xf32>
    %cst_7 = arith.constant dense<0.000000e+00> : vector<13x512xf32>
    %16 = tpu.matmul %14, %15, %cst_7 {dimension_numbers = #tpu.dot_dimension_numbers<[1], [0], [0], [1], [0, 0, 1, 1], [], []>} : vector<13x3xf32>, vector<3x512xf32>, vector<13x512xf32> -> vector<13x512xf32>
    %17 = arith.addf %13, %16 : vector<13x512xf32>
    %18 = vector.extract_strided_slice %2 {offsets = [0, 24], sizes = [13, 3], strides = [1, 1]} : vector<13x27xf32> to vector<13x3xf32>
    %19 = vector.extract_strided_slice %1 {offsets = [0, 129], sizes = [3, 512], strides = [1, 1]} : vector<12x768xf32> to vector<3x512xf32>
    %cst_8 = arith.constant dense<0.000000e+00> : vector<13x512xf32>
    %20 = tpu.matmul %18, %19, %cst_8 {dimension_numbers = #tpu.dot_dimension_numbers<[1], [0], [0], [1], [0, 0, 1, 1], [], []>} : vector<13x3xf32>, vector<3x512xf32>, vector<13x512xf32> -> vector<13x512xf32>
    %21 = arith.addf %17, %20 : vector<13x512xf32>
    %c0_9 = arith.constant 0 : index
    %c0_10 = arith.constant 0 : index
    %22 = vector.load %arg4[%c0_9, %c0_10] : memref<13x1xf32, #tpu.memory_space<vmem>>, vector<13x1xf32>
    %23 = vector.broadcast %22 : vector<13x1xf32> to vector<13x512xf32>
    %24 = arith.addf %21, %23 : vector<13x512xf32>
    %25 = vector.extract_strided_slice %1 {offsets = [9, 0], sizes = [3, 512], strides = [1, 1]} : vector<12x768xf32> to vector<3x512xf32>
    %26 = vector.extract_strided_slice %1 {offsets = [6, 1], sizes = [3, 512], strides = [1, 1]} : vector<12x768xf32> to vector<3x512xf32>
    %27 = arith.maximumf %25, %26 : vector<3x512xf32>
    %28 = vector.extract_strided_slice %1 {offsets = [3, 128], sizes = [3, 512], strides = [1, 1]} : vector<12x768xf32> to vector<3x512xf32>
    %29 = arith.maximumf %27, %28 : vector<3x512xf32>
    %30 = vector.extract_strided_slice %1 {offsets = [0, 129], sizes = [3, 512], strides = [1, 1]} : vector<12x768xf32> to vector<3x512xf32>
    %31 = arith.maximumf %29, %30 : vector<3x512xf32>
    %cst_11 = arith.constant 0.000000e+00 : f32
    %32 = vector.broadcast %cst_11 : f32 to vector<13x512xf32>
    %33 = arith.cmpf ogt, %24, %32 : vector<13x512xf32>
    %c0_12 = arith.constant 0 : index
    %c0_13 = arith.constant 0 : index
    %34 = vector.load %arg5[%c0_12, %c0_13] : memref<13x1xf32, #tpu.memory_space<vmem>>, vector<13x1xf32>
    %35 = vector.broadcast %34 : vector<13x1xf32> to vector<13x512xf32>
    %36 = arith.mulf %24, %35 : vector<13x512xf32>
    %37 = arith.select %33, %24, %36 : vector<13x512xi1>, vector<13x512xf32>
    %c0_14 = arith.constant 0 : index
    %c0_15 = arith.constant 0 : index
    %c0_16 = arith.constant 0 : index
    %38 = vector.load %arg7[%c0_14, %c0_15, %c0_16] : memref<1x16x512xf32, #tpu.memory_space<vmem>>, vector<1x13x512xf32>
    %39 = vector.shape_cast %38 : vector<1x13x512xf32> to vector<13x512xf32>
    %40 = vector.shape_cast %37 : vector<13x512xf32> to vector<1x13x512xf32>
    tpu.vector_store %arg7[%c0_14, %c0_15, %c0_16], %40 {strides = array<i32>} : memref<1x16x512xf32, #tpu.memory_space<vmem>>, vector<1x13x512xf32>,
    %cst_17 = arith.constant 0.000000e+00 : f32
    %41 = vector.broadcast %cst_17 : f32 to vector<3x512xf32>
    %42 = arith.cmpf ogt, %31, %41 : vector<3x512xf32>
    %c0_18 = arith.constant 0 : index
    %c0_19 = arith.constant 0 : index
    %43 = vector.load %arg6[%c0_18, %c0_19] : memref<3x1xf32, #tpu.memory_space<vmem>>, vector<3x1xf32>
    %44 = vector.broadcast %43 : vector<3x1xf32> to vector<3x512xf32>
    %45 = arith.mulf %31, %44 : vector<3x512xf32>
    %46 = arith.select %42, %31, %45 : vector<3x512xi1>, vector<3x512xf32>
    %c0_20 = arith.constant 0 : index
    %c13 = arith.constant 13 : index
    %c0_21 = arith.constant 0 : index
    %47 = vector.load %arg7[%c0_20, %c13, %c0_21] : memref<1x16x512xf32, #tpu.memory_space<vmem>>, vector<1x3x512xf32>
    %48 = vector.shape_cast %47 : vector<1x3x512xf32> to vector<3x512xf32>
    %49 = vector.shape_cast %46 : vector<3x512xf32> to vector<1x3x512xf32>
    tpu.vector_store %arg7[%c0_20, %c13, %c0_21], %49 {strides = array<i32>} : memref<1x16x512xf32, #tpu.memory_space<vmem>>, vector<1x3x512xf32>,
    return
  }
  func.func @transform_0(%arg0: i32, %arg1: i32) -> (i32, i32, i32, i32) {
    %c0_i32 = arith.constant 0 : i32
    %c0_i32_0 = arith.constant 0 : i32
    %c0_i32_1 = arith.constant 0 : i32
    return %arg0, %arg1, %c0_i32, %c0_i32_0 : i32, i32, i32, i32
  }
  func.func @transform_1(%arg0: i32, %arg1: i32) -> (i32, i32) {
    %c0_i32 = arith.constant 0 : i32
    %c0_i32_0 = arith.constant 0 : i32
    %c0_i32_1 = arith.constant 0 : i32
    return %c0_i32, %c0_i32_0 : i32, i32
  }
  func.func @transform_2(%arg0: i32, %arg1: i32) -> (i32, i32) {
    %c0_i32 = arith.constant 0 : i32
    %c0_i32_0 = arith.constant 0 : i32
    %c0_i32_1 = arith.constant 0 : i32
    return %c0_i32, %c0_i32_0 : i32, i32
  }
  func.func @transform_3(%arg0: i32, %arg1: i32) -> (i32, i32) {
    %c0_i32 = arith.constant 0 : i32
    %c0_i32_0 = arith.constant 0 : i32
    %c0_i32_1 = arith.constant 0 : i32
    return %c0_i32, %c0_i32_0 : i32, i32
  }
  func.func @transform_4(%arg0: i32, %arg1: i32) -> (i32, i32) {
    %c0_i32 = arith.constant 0 : i32
    %c0_i32_0 = arith.constant 0 : i32
    %c0_i32_1 = arith.constant 0 : i32
    return %c0_i32, %c0_i32_0 : i32, i32
  }
  func.func @transform_5(%arg0: i32, %arg1: i32) -> (i32, i32, i32) {
    %c0_i32 = arith.constant 0 : i32
    %c0_i32_0 = arith.constant 0 : i32
    return %arg0, %c0_i32, %arg1 : i32, i32, i32
  }
}

</mosaic_0001>

<bundles_post_ra>
// kernel: initial_block_forward.1
= control target key start
LH: loop header
LB: loop body
LE: loop exit
PB: predicated region body
PF: predicated region fallthrough
CT: control target
= control target key end

     0   :  { %s1697_s18 = smov 0   ;;  %s1699_s19 = smov 0   ;;  %s2041_s0 = inlined_call_operand.vmem [shape: f32[2,2,12,768], index: 0, kind: input, shape index: {}]   ;;  %s2042_s1 = inlined_call_operand.vmem [shape: f32[13,27], index: 1, kind: input, shape index: {}]   ;;  %s2043_s2 = inlined_call_operand.vmem [shape: f32[13,1], index: 2, kind: input, shape index: {}]   ;;  %s2044_s3 = inlined_call_operand.vmem [shape: f32[13,1], index: 3, kind: input, shape index: {}]   ;;  %s2045_s4 = inlined_call_operand.vmem [shape: f32[3,1], index: 4, kind: input, shape index: {}]   ;;  %s2046_s5 = inlined_call_operand.vmem [shape: f32[2,16,1024], index: 5, kind: output, shape index: {}]  }
   0x1   :  { %s1701_s20 = smov 0   ;;  %s1703_s21 = smov 0  }
   0x2   :  { %s1705_s22 = smov 0   ;;  %s1707_s23 = smov 0  }
   0x3   :  { %s1709_s24 = smov 0  }
   0x4 LB: > { %s24_s25 = sadd.s32 1, %s1650_s22  ;;  %s27_s26 = sadd.s32 1, %s1654_s23  ;;  %s1658_s24 = sphi %s1709_s24, %s15_s24   ;;  %s1654_s23 = sphi %s1707_s23, %s2053_s23   ;;  %s1650_s22 = sphi %s1705_s22, %s2052_s22   ;;  %s1646_s21 = sphi %s1703_s21, %s2051_s21   ;;  %s1642_s20 = sphi %s1701_s20, %s2050_s20   ;;  %s1638_s19 = sphi %s1699_s19, %s2049_s19   ;;  %s1634_s18 = sphi %s1697_s18, %s2048_s18  }
   0x5   : > { %p25_p0 = scmp.ge.s32.totalorder %s24_s25, 2  ;;  %s1484_s27 = sadd.s32 4294967295, %s1658_s24  }
   0x6   : > { %p158_p1 = scmp.ne.s32.totalorder %s1638_s19, %s1634_s18  ;;  %p159_p2 = scmp.eq.s32.totalorder %s1484_s27, 3 }
   0x7   : > { %s2055_s25 = smov (%p25_p0, %s24_s25), 0  ;;  %s2057_s26 = smov (!%p25_p0, %s27_s26), %s1654_s23 }
   0x8   : > { %s144_s28 = ssub.s32 %s1650_s22, %s2055_s25  ;;  %p29_p3 = scmp.ge.s32.totalorder %s2057_s26, 2 }
   0x9   : > { %p1488_p4 = scmp.ge.s32.totalorder %s1658_s24, 1  ;;  %p1743_p5 = por %p159_p2, %p158_p1 }
   0xa   : > { %p207_p6 = scmp.lt.s32.totalorder %s1658_s24, 5  ;;  %s2059_s26 = smov (%p29_p3, %s2057_s26), 0 }
   0xb   : > { %s143_s30 = ssub.s32 %s1654_s23, %s2059_s26  ;;  %s148_s7 = sadd.s32 1, %s1638_s19 }
   0xc   : > { %p208_p7 = pnand %p1488_p4, %p207_p6  ;;  %s145_s6 = sor.u32 %s144_s28, %s143_s30 }
   0xd   : > { %p146_p8 = scmp.eq.s32.totalorder %s145_s6, 0  ;;  %p238_p9 = scmp.lt.s32.totalorder (!%p208_p7), %s1646_s21, 1 }
   0xe   : > { %211 = sbr.rel (%p208_p7) target bundleno = 393 (0x189), region = 40  ;;  %s1660_s11 = smov (!%p208_p7), 116  }
   0xf   : > { %s1754_s8 = scalar_select %p146_p8, %s1638_s19, %s148_s7  }
  0x10   : > { %p240_p10 = scmp.lt.s32.totalorder (!%p208_p7), %s1642_s20, 1  ;;  %s1662_s9 = smov (!%p208_p7), 127  }
  0x11   : > { %s1663_s10 = smov (!%p208_p7), 110   ;;  %s1665_s12 = smov (!%p208_p7), 104  }
  0x13   : > { %v1759_v0 = vld [vmem:[%s2042_s1] sm:$0xff]  ;;  %v1767_v1 = vld [vmem:[%s2042_s1 + $0x8] sm:$0x1f]  ;;  %s239_s14 = scalar_select %p238_p9, %s1646_s21, 1  ;;  %v1661_v2 = vmov 0.0   ;;  %vm272_vm0 = vcmask 1045504  }
  0x14   : > { %263 = vrot.lane.b32.xlu0 %v1759_v0, %s1660_s11  ;;  %349 = vmatprep.mubr.f32.mxu0 %v1661_v2  ;;  %s241_s15 = scalar_select %p240_p10, %s1642_s20, 1  ;;  %vm444_vm1 = vcmask 1043456   ;;  %vm812_vm2 = vcmask 1041408   ;;  %vm636_vm3 = vcmask 1042432   ;;  %v1666_v34 = vmov 0   ;;  %v1192_v48 = vld [vmem:[%s2043_s2] sm:$0xff] }
  0x15   : > { %426 = vmatprep.mubr.f32.mxu1 %v1661_v2  ;;  %s1538_s16 = smul.u32 24, %s239_s14  ;;  %1603 = vset.pattern.permute.xlu1 %v1666_v34  ;;  %v1336_v44 = vld [vmem:[%s2045_s4] sm:$0x7]  ;;  %v1193_v50 = vld [vmem:[%s2043_s2 + $0x8] sm:$0x1f]  ;;  %vm267_vm4 = vcmask 48128  }
  0x16   : > { %s1537_s17 = smul.u32 12, %s241_s15  ;;  %1602 = vset.pattern.permute.xlu0 %v1666_v34  ;;  %v1297_v52 = vld [vmem:[%s2044_s3 + $0x8] sm:$0x1f]  ;;  %v1296_v54 = vld [vmem:[%s2044_s3] sm:$0xff]  ;;  %vm439_vm5 = vcmask 97280   ;;  %vm626_vm6 = vcmask 1039360  }
  0x17   : > { %vm631_vm7 = vcmask 23552  }
  0x18   : > { %265 = vrot.lane.b32.xlu0 %v1767_v1, %s1660_s11  ;;  %s244_s27 = sadd.s32 %s1538_s16, %s1537_s17  ;;  %s1664_s11 = smov 107  }
  0x19   : > { %s1490_s28 = sshll.u32 %s244_s27, 3 }
  0x1a   : > { %s1777_s7 = scalar_lea.vmem %s2041_s0, %s1490_s28 }
  0x1b   : > { %v1780_v3 = vld [vmem:[%s1777_s7 + $0x18] sm:$0xff]  ;;  %v1783_v4 = vld [vmem:[%s1777_s7 + $0x8] sm:$0xff]  ;;  %v1790_v5 = vld [vmem:[%s1777_s7 + $0x10] sm:$0xff] }
  0x1c   : > { %622 = vrot.lane.b32.xlu0 %v1780_v3, %s1662_s9  ;;  %618 = vrot.lane.b32.xlu1 %v1783_v4, %s1662_s9  ;;  %v1793_v6 = vld [vmem:[%s1777_s7 + $0x20] sm:$0xff]  ;;  %v1806_v9 = vld [vmem:[%s1777_s7 + $0x38] sm:$0xf]  ;;  %v819_v11 = vrot.slane %v1790_v5, 6  ;;  %v816_v14 = vrot.slane %v1783_v4, 6  ;;  %v822_v21 = vrot.slane %v1780_v3, 6 }
  0x1d   : > { %v1796_v7 = vld [vmem:[%s1777_s7] sm:$0xff]  ;;  %1491 = vmatprep.subr.msk.mxu0 %vm272_vm0, %v1790_v5  ;;  %1495 = vmatprep.subr.msk.mxu1 %vm272_vm0, %v1793_v6  ;;  %v1809_v10 = vld [vmem:[%s1777_s7 + $0x48] sm:$0xf]  ;;  %v258_v13 = vld [vmem:[%s1777_s7 + $0x50] sm:$0xf]  ;;  %v817_v16 = vrot.slane %v1806_v9, 6 }
  0x1e   : > { %v1803_v8 = vld [vmem:[%s1777_s7 + $0x40] sm:$0xf]  ;;  %1492 = vmatpush1.msk.msra.mxu0 %vm272_vm0, %v1783_v4  ;;  %1496 = vmatpush1.msk.msra.mxu1 %vm272_vm0, %v1780_v3  ;;  %v825_v17 = vrot.slane %v1793_v6, 6  ;;  %v826_v18 = vrot.slane %v258_v13, 6  ;;  %v823_v22 = vrot.slane %v1809_v10, 6  ;;  %v813_v25 = vrot.slane %v1796_v7, 6 }
  0x1f   : > { %1499 = vmatprep.subr.msk.mxu0 %vm444_vm1, %v1806_v9  ;;  %1503 = vmatprep.subr.msk.mxu1 %vm444_vm1, %v1809_v10  ;;  %v820_v12 = vrot.slane %v1803_v8, 6  ;;  %v818_v19 = vsel %vm812_vm2, %v816_v14, %v817_v16  ;;  %v1840_v23 = vld [vmem:[%s1777_s7 + $0x30] sm:$0xf]  ;;  %v253_v27 = vld [vmem:[%s1777_s7 + $0x28] sm:$0xff]  ;;  %v1215_v29 = vrot.slane %v1783_v4, 5  ;;  %v1216_v30 = vrot.slane %v1806_v9, 5 }
  0x20   : > { %620 = vrot.lane.b32.xlu1 %v1790_v5, %s1662_s9  ;;  %616 = vrot.lane.b32.xlu0 %v1796_v7, %s1662_s9  ;;  %v827_v20 = vsel %vm812_vm2, %v825_v17, %v826_v18  ;;  %v824_v24 = vsel %vm812_vm2, %v822_v21, %v823_v22  ;;  %v814_v26 = vrot.slane %v1840_v23, 6  ;;  %v1212_v31 = vrot.slane %v1796_v7, 5 }
  0x21   : > { %v821_v15 = vsel %vm812_vm2, %v819_v11, %v820_v12  ;;  %v1213_v32 = vrot.slane %v1840_v23, 5  ;;  %v1217_v33 = vsel %vm636_vm3, %v1215_v29, %v1216_v30  ;;  %v1221_v35 = vrot.slane %v1780_v3, 5 }
  0x22   : > { %v815_v28 = vsel %vm812_vm2, %v813_v25, %v814_v26  ;;  %v1222_v36 = vrot.slane %v1809_v10, 5  ;;  %v1218_v38 = vrot.slane %v1790_v5, 5  ;;  %v1219_v39 = vrot.slane %v1803_v8, 5 }
  0x23   : > { %v1214_v37 = vsel %vm636_vm3, %v1212_v31, %v1213_v32  ;;  %v1224_v42 = vrot.slane %v1793_v6, 5  ;;  %v1225_v43 = vrot.slane %v258_v13, 5  ;;  %v1261_v45 = vrot.slane %v1783_v4, 7 }
  0x24   : > { %624 = vrot.lane.b32.xlu1 %v1793_v6, %s1662_s9  ;;  %613 = vrot.lane.b32.xlu0 %v1767_v1, %s1663_s10  ;;  %v1223_v40 = vsel %vm636_vm3, %v1221_v35, %v1222_v36  ;;  %v1220_v41 = vsel %vm636_vm3, %v1218_v38, %v1219_v39  ;;  %v1263_v47 = vrot.slane %v1780_v3, 7  ;;  %v1265_v49 = vrot.slane %v253_v27, 7 }
  0x25   : > { %v1226_v46 = vsel %vm636_vm3, %v1224_v42, %v1225_v43  ;;  %v1262_v51 = vrot.slane %v1790_v5, 7  ;;  %v1264_v53 = vrot.slane %v1793_v6, 7  ;;  %v1249_v39 = vrot.slane %v1783_v4, 2 }
  0x28   : > { %611 = vrot.lane.b32.xlu1 %v1759_v0, %s1663_s10  ;;  %832 = vrot.lane.b32.xlu0 %v821_v15, %s1662_s9 }
  0x2c   : > { %830 = vrot.lane.b32.xlu1 %v818_v19, %s1662_s9  ;;  %836 = vrot.lane.b32.xlu0 %v827_v20, %s1662_s9 }
  0x30   : > { %834 = vrot.lane.b32.xlu1 %v824_v24, %s1662_s9  ;;  %807 = vrot.lane.b32.xlu0 %v1759_v0, %s1664_s11 }
  0x34   : > { %1021 = vrot.lane.b32.xlu0 %v253_v27, %s1662_s9  ;;  %828 = vrot.lane.b32.xlu1 %v815_v28, %s1662_s9 }
  0x38   : > { %809 = vrot.lane.b32.xlu1 %v1767_v1, %s1664_s11  ;;  %1018 = vrot.lane.b32.xlu0 %v1767_v1, %s1665_s12 }
  0x3c   : > { %1016 = vrot.lane.b32.xlu1 %v1759_v0, %s1665_s12  ;;  %1229 = vrot.lane.b32.xlu0 %v1217_v33, %s1662_s9  ;;  %s1533_s12 = sshll.u32 (%p1743_p5), %s1646_s21, 4 }
  0x40   : > { %1227 = vrot.lane.b32.xlu1 %v1214_v37, %s1662_s9  ;;  %1233 = vrot.lane.b32.xlu0 %v1223_v40, %s1662_s9 }
  0x44   : > { %1231 = vrot.lane.b32.xlu1 %v1220_v41, %s1662_s9  ;;  %1339 = vperm.xlu0 %1602, %v1336_v44  }
  0x48   : > { %1235 = vrot.lane.b32.xlu1 %v1226_v46, %s1662_s9  ;;  %1266 = vrot.lane.b32.xlu0 %v1261_v45, %s1662_s9 }
  0x4c   : > { %1196 = vperm.xlu1 %1603, %v1192_v48   ;;  %1270 = vrot.lane.b32.xlu0 %v1263_v47, %s1662_s9  ;;  %v1250_v48 = vrot.slane %v1790_v5, 2 }
  0x50   : > { %1201 = vperm.xlu1 %1603, %v1193_v50   ;;  %1274 = vrot.lane.b32.xlu0 %v1265_v49, %s1662_s9  ;;  %v1251_v49 = vrot.slane %v1780_v3, 2 }
  0x54   : > { %1268 = vrot.lane.b32.xlu1 %v1262_v51, %s1662_s9  ;;  %1305 = vperm.xlu0 %1602, %v1297_v52  }
  0x58   : > { %1272 = vrot.lane.b32.xlu1 %v1264_v53, %s1662_s9  ;;  %s235_s9 = sand.u32 1, %s1634_s18   ;;  %s1532_s18 = sshll.u32 (%p1743_p5), %s1642_s20, 2 }
  0x59   : > { %s1489_s10 = sshll.u32 %s235_s9, 6  ;;  %s1376_s13 = sadd.s32 (%p1743_p5), %s1533_s12, %s1532_s18 }
  0x5a   : > { %s1982_s11 = scalar_lea.vmem [#allocation2], %s1489_s10  ;;  %s1534_s29 = sshll.u32 (%p1743_p5), %s1376_s13, 3 }
  0x5b   : > { %s1378_s16 = scalar_lea.vmem (%p1743_p5), %s2046_s5, %s1534_s29 }
  0x5c   : > { %1300 = vperm.xlu1 %1603, %v1296_v54  }
  0x86   : > { %v264_v55 = vpop.permute.xlu0 %263 }
  0x87   : > { %1493 = vmatmul.mubr.msk.f32.vlgmr.msra.gmra.mxu0 %vm267_vm4, %v264_v55  ;;  %1497 = vmatmul.mubr.msk.f32.vlgmr.msra.gmra.mxu1 %vm267_vm4, %v264_v55 }
  0x88   : > { %355 = vmatprep.mubr.f32.mxu0 %v1661_v2  ;;  %432 = vmatprep.mubr.f32.mxu1 %v1661_v2 }
  0x89   : > { %1500 = vmatpush1.msk.msra.mxu0 %vm444_vm1, %v1840_v23  ;;  %1504 = vmatpush1.msk.msra.mxu1 %vm444_vm1, %v1803_v8 }
  0x8a   : > { %v266_v56 = vpop.permute.xlu0 %265  ;;  %487 = vmatprep.subr.mxu0 %v1783_v4  ;;  %564 = vmatprep.subr.mxu1 %v1780_v3 }
  0x8b   : > { %1494 = vmatmul.mubr.msk.f32.gmra.mxu0 %vm267_vm4, %v266_v56  ;;  %1498 = vmatmul.mubr.msk.f32.gmra.mxu1 %vm267_vm4, %v266_v56 }
  0x8c   : > { %488 = vmatpush1.msra.mxu0 %v1796_v7  ;;  %521 = vmatprep.mubr.f32.mxu0 %v1661_v2 }
  0x8d   : > { %565 = vmatpush1.msra.mxu1 %v1790_v5  ;;  %598 = vmatprep.mubr.f32.mxu1 %v1661_v2  ;;  %v1252_v5 = vrot.slane %v1793_v6, 2 }
  0x8e   : > { %v623_v57 = vpop.permute.xlu0 %622  ;;  %v619_v58 = vpop.permute.xlu1 %618 }
  0x8f   : > { %1505 = vmatmul.mubr.msk.f32.vlgmr.msra.gmra.mxu1 %vm439_vm5, %v1759_v0  ;;  %1501 = vmatmul.mubr.msk.f32.vlgmr.msra.gmra.mxu0 %vm439_vm5, %v1759_v0 }
  0x90   : > { %527 = vmatprep.mubr.f32.mxu0 %v1661_v2  ;;  %604 = vmatprep.mubr.f32.mxu1 %v1661_v2 }
  0x92   : > { %v621_v59 = vpop.permute.xlu1 %620  ;;  %v617_v60 = vpop.permute.xlu0 %616 }
  0x93   : > { %1506 = vmatmul.mubr.msk.f32.gmra.mxu1 %vm439_vm5, %v1767_v1  ;;  %1502 = vmatmul.mubr.msk.f32.gmra.mxu0 %vm439_vm5, %v1767_v1  ;;  %v628_v61 = vsel %vm626_vm6, %v619_v58, %v621_v59  ;;  %v627_v62 = vsel %vm626_vm6, %v617_v60, %v619_v58  ;;  %v629_v1 = vsel %vm626_vm6, %v621_v59, %v623_v57 }
  0x94   : > { %786 = vmatprep.mubr.f32.mxu1 %v1661_v2  ;;  %709 = vmatprep.mubr.f32.mxu0 %v1661_v2 }
  0x95   : > { %1507 = vmatprep.subr.msk.mxu0 %vm636_vm3, %v628_v61 }
  0x96   : > { %1508 = vmatpush1.msk.msra.mxu0 %vm636_vm3, %v627_v62  ;;  %v625_v63 = vpop.permute.xlu1 %624  ;;  %v614_v0 = vpop.permute.xlu0 %613 }
  0x97   : > { %v630_v7 = vsel %vm626_vm6, %v623_v57, %v625_v63 }
  0x98   : > { %1511 = vmatprep.subr.msk.mxu1 %vm636_vm3, %v630_v7 }
  0x99   : > { %1512 = vmatpush1.msk.msra.mxu1 %vm636_vm3, %v629_v1 }
  0x9a   : > { %v612_v11 = vpop.permute.xlu1 %611  ;;  %v833_v12 = vpop.permute.xlu0 %832 }
  0x9b   : > { %1509 = vmatmul.mubr.msk.f32.vlgmr.msra.gmra.mxu0 %vm631_vm7, %v612_v11  ;;  %1513 = vmatmul.mubr.msk.f32.vlgmr.msra.gmra.mxu1 %vm631_vm7, %v612_v11 }
  0x9c   : > { %792 = vmatprep.mubr.f32.mxu1 %v1661_v2  ;;  %715 = vmatprep.mubr.f32.mxu0 %v1661_v2 }
  0x9e   : > { %v831_v13 = vpop.permute.xlu1 %830  ;;  %v837_v14 = vpop.permute.xlu0 %836 }
  0x9f   : > { %v839_v15 = vsel %vm626_vm6, %v831_v13, %v833_v12  ;;  %1510 = vmatmul.mubr.msk.f32.gmra.mxu0 %vm631_vm7, %v614_v0  ;;  %1514 = vmatmul.mubr.msk.f32.gmra.mxu1 %vm631_vm7, %v614_v0 }
  0xa0   : > { %1515 = vmatprep.subr.msk.mxu0 %vm636_vm3, %v839_v15  ;;  %995 = vmatprep.mubr.f32.mxu1 %v1661_v2 }
  0xa1   : > { %918 = vmatprep.mubr.f32.mxu0 %v1661_v2 }
  0xa2   : > { %v835_v16 = vpop.permute.xlu1 %834  ;;  %v808_v17 = vpop.permute.xlu0 %807 }
  0xa3   : > { %v840_v18 = vsel %vm626_vm6, %v833_v12, %v835_v16  ;;  %v841_v19 = vsel %vm626_vm6, %v835_v16, %v837_v14 }
  0xa4   : > { %1519 = vmatprep.subr.msk.mxu1 %vm636_vm3, %v841_v19 }
  0xa5   : > { %1520 = vmatpush1.msk.msra.mxu1 %vm636_vm3, %v840_v18 }
  0xa6   : > { %1521 = vmatmul.mubr.msk.f32.vlgmr.msra.gmra.mxu1 %vm631_vm7, %v808_v17  ;;  %v1022_v20 = vpop.permute.xlu0 %1021  ;;  %v829_v21 = vpop.permute.xlu1 %828 }
  0xa7   : > { %v1023_v22 = vsel %vm626_vm6, %v625_v63, %v1022_v20  ;;  %v838_v24 = vsel %vm626_vm6, %v829_v21, %v831_v13  ;;  %1001 = vmatprep.mubr.f32.mxu1 %v1661_v2 }
  0xa8   : > { %1516 = vmatpush1.msk.msra.mxu0 %vm636_vm3, %v838_v24  ;;  %1527 = vmatprep.subr.msk.mxu1 %vm636_vm3, %v1023_v22 }
  0xa9   : > { %1517 = vmatmul.mubr.msk.f32.vlgmr.msra.gmra.mxu0 %vm631_vm7, %v808_v17  ;;  %1523 = vmatprep.subr.msk.mxu0 %vm636_vm3, %v629_v1 }
  0xaa   : > { %1528 = vmatpush1.msk.msra.mxu1 %vm636_vm3, %v630_v7  ;;  %v810_v25 = vpop.permute.xlu1 %809  ;;  %1524 = vmatpush1.msk.msra.mxu0 %vm636_vm3, %v628_v61  ;;  %v1019_v27 = vpop.permute.xlu0 %1018 }
  0xab   : > { %1522 = vmatmul.mubr.msk.f32.gmra.mxu1 %vm631_vm7, %v810_v25  ;;  %924 = vmatprep.mubr.f32.mxu0 %v1661_v2 }
  0xac   : > { %1171 = vmatprep.mubr.f32.mxu1 %v1661_v2 }
  0xad   : > { %1518 = vmatmul.mubr.msk.f32.gmra.mxu0 %vm631_vm7, %v810_v25 }
  0xae   : > { %v1017_v26 = vpop.permute.xlu1 %1016  ;;  %1094 = vmatprep.mubr.f32.mxu0 %v1661_v2  ;;  %v1230_v30 = vpop.permute.xlu0 %1229 }
  0xaf   : > { %1529 = vmatmul.mubr.msk.f32.vlgmr.msra.gmra.mxu1 %vm631_vm7, %v1017_v26 }
  0xb0   : > { %1177 = vmatprep.mubr.f32.mxu1 %v1661_v2 }
  0xb1   : > { %1525 = vmatmul.mubr.msk.f32.vlgmr.msra.gmra.mxu0 %vm631_vm7, %v1017_v26 }
  0xb2   : > { %1100 = vmatprep.mubr.f32.mxu0 %v1661_v2  ;;  %v1228_v28 = vpop.permute.xlu1 %1227  ;;  %v1234_v32 = vpop.permute.xlu0 %1233 }
  0xb3   : > { %1530 = vmatmul.mubr.msk.f32.gmra.mxu1 %vm631_vm7, %v1019_v27  ;;  %v1237_v34 = vsel %vm626_vm6, %v1228_v28, %v1230_v30 }
  0xb4   : > { %v1245_v35 = vmax.f32 %v1840_v23, %v1237_v34 }
  0xb5   : > { %1526 = vmatmul.mubr.msk.f32.gmra.mxu0 %vm631_vm7, %v1019_v27 }
  0xb6   : > { %v1232_v29 = vpop.permute.xlu1 %1231  ;;  %v1257_v44 = vmax.f32 %v1245_v35, %v1249_v39 }
  0xb7   : > { %v1238_v2 = vsel %vm626_vm6, %v1230_v30, %v1232_v29  ;;  %v1239_v38 = vsel %vm626_vm6, %v1232_v29, %v1234_v32 }
  0xb8   : > { %v1246_v40 = vmax.f32 %v1806_v9, %v1238_v2  ;;  %v1247_v41 = vmax.f32 %v1803_v8, %v1239_v38 }
  0xba   : > { %v1236_v31 = vpop.permute.xlu1 %1235  ;;  %v1258_v51 = vmax.f32 %v1246_v40, %v1250_v48  ;;  %v1259_v8 = vmax.f32 %v1247_v41, %v1251_v49 }
  0xbb   : > { %v1240_v23 = vsel %vm626_vm6, %v1234_v32, %v1236_v31 }
  0xbc   : > { %v1248_v4 = vmax.f32 %v1809_v10, %v1240_v23 }
  0xbe   : > { %v1260_v60 = vmax.f32 %v1248_v4, %v1252_v5 }
  0xbf   : > { %v1340_v36 = vpop.permute.xlu0 %1339 }
  0xc0   : > { %v1341_v42 = vrot.slane %v1340_v36, 7 }
  0xc3   : > { %v1267_v43 = vpop.permute.xlu0 %1266 }
  0xc7   : > { %v1962_v33 = vpop.permute.xlu1 %1196  ;;  %v1271_v9 = vpop.permute.xlu0 %1270 }
  0xcb   : > { %v1966_v37 = vpop.permute.xlu1 %1201  ;;  %v1275_v59 = vpop.permute.xlu0 %1274 }
  0xcf   : > { %v1269_v45 = vpop.permute.xlu1 %1268 }
  0xd0   : > { %v1276_v46 = vsel %vm626_vm6, %v1267_v43, %v1269_v45  ;;  %v1277_v53 = vsel %vm626_vm6, %v1269_v45, %v1271_v9 }
  0xd1   : > { %v1284_v47 = vmax.f32 %v1257_v44, %v1276_v46  ;;  %v1285_v56 = vmax.f32 %v1258_v51, %v1277_v53 }
  0xd3   : > { %v1343_v50 = vmul.f32 %v1341_v42, %v1284_v47  ;;  %v1273_v52 = vpop.permute.xlu1 %1272  ;;  %vm1332_vm8 = vcmp.gt.f32.partialorder %v1284_v47, 0.0  ;;  %v1344_v58 = vmul.f32 %v1341_v42, %v1285_v56  ;;  %vm1333_vm9 = vcmp.gt.f32.partialorder %v1285_v56, 0.0 }
  0xd4   : > { %v1278_v54 = vsel %vm626_vm6, %v1271_v9, %v1273_v52  ;;  %v1279_v61 = vsel %vm626_vm6, %v1273_v52, %v1275_v59 }
  0xd5   : > { %v1347_v55 = vsel %vm1332_vm8, %v1284_v47, %v1343_v50  ;;  %v1286_v57 = vmax.f32 %v1259_v8, %v1278_v54  ;;  %v1348_v62 = vsel %vm1333_vm9, %v1285_v56, %v1344_v58  ;;  %v1287_v6 = vmax.f32 %v1260_v60, %v1279_v61 }
  0xd6   : > { %v1355_v3 = vrot.slane %v1347_v55, 4  ;;  %v1356_v0 = vrot.slane %v1348_v62, 4 }
  0xd7   : > { %v1345_v10 = vmul.f32 %v1341_v42, %v1286_v57  ;;  %vm1334_vm10 = vcmp.gt.f32.partialorder %v1286_v57, 0.0  ;;  %v1346_v1 = vmul.f32 %v1341_v42, %v1287_v6  ;;  %vm1335_vm11 = vcmp.gt.f32.partialorder %v1287_v6, 0.0 }
  0xd8   : > { %1363 = vst [vmem:[%s1982_s11 + $0x20] sm:$0xe0] %v1355_v3  ;;  %1364 = vst [vmem:[%s1982_s11 + $0x28] sm:$0xe0] %v1356_v0 }
  0xd9   : > { %v1349_v63 = vsel %vm1334_vm10, %v1286_v57, %v1345_v10  ;;  %v1350_v11 = vsel %vm1335_vm11, %v1287_v6, %v1346_v1  ;;  %v1301_v6 = vpop.permute.xlu1 %1300 }
  0xda   : > { %v1357_v7 = vrot.slane %v1349_v63, 4  ;;  %v1358_v12 = vrot.slane %v1350_v11, 4 }
  0xdc   : > { %1365 = vst [vmem:[%s1982_s11 + $0x30] sm:$0xe0] %v1357_v7  ;;  %1366 = vst [vmem:[%s1982_s11 + $0x38] sm:$0xe0] %v1358_v12 }
 0x147   : > { %v351_v13 = vpop.f32.mrf.mxu0  ;;  %v428_v14 = vpop.f32.mrf.mxu1 }
 0x149   : > { %v353_v15 = vpop.f32.mrf.mxu0  ;;  %v430_v16 = vpop.f32.mrf.mxu1 }
 0x14b   : > { %v357_v17 = vpop.f32.mrf.mxu0  ;;  %v434_v18 = vpop.f32.mrf.mxu1 }
 0x14d   : > { %v359_v19 = vpop.f32.mrf.mxu0  ;;  %v436_v20 = vpop.f32.mrf.mxu1 }
 0x14f   : > { %v600_v21 = vpop.f32.mrf.mxu1  ;;  %v523_v22 = vpop.f32.mrf.mxu0 }
 0x150   : > { %v601_v42 = vadd.f32 %v600_v21, %v428_v14  ;;  %v524_v45 = vadd.f32 %v523_v22, %v351_v13 }
 0x151   : > { %v525_v24 = vpop.f32.mrf.mxu0  ;;  %v602_v25 = vpop.f32.mrf.mxu1 }
 0x152   : > { %v603_v23 = vadd.f32 %v602_v25, %v430_v16  ;;  %v526_v9 = vadd.f32 %v525_v24, %v353_v15 }
 0x153   : > { %v606_v26 = vpop.f32.mrf.mxu1  ;;  %v529_v27 = vpop.f32.mrf.mxu0 }
 0x154   : > { %v607_v51 = vadd.f32 %v606_v26, %v434_v18  ;;  %v530_v8 = vadd.f32 %v529_v27, %v357_v17 }
 0x155   : > { %v531_v28 = vpop.f32.mrf.mxu0  ;;  %v608_v29 = vpop.f32.mrf.mxu1 }
 0x156   : > { %v532_v54 = vadd.f32 %v531_v28, %v359_v19  ;;  %v609_v5 = vadd.f32 %v608_v29, %v436_v20 }
 0x15b   : > { %v711_v30 = vpop.f32.mrf.mxu0  ;;  %v788_v31 = vpop.f32.mrf.mxu1 }
 0x15c   : > { %v801_v46 = vadd.f32 %v788_v31, %v601_v42  ;;  %v799_v49 = vadd.f32 %v711_v30, %v524_v45 }
 0x15d   : > { %v790_v32 = vpop.f32.mrf.mxu1  ;;  %v713_v34 = vpop.f32.mrf.mxu0 }
 0x15e   : > { %v802_v4 = vadd.f32 %v790_v32, %v603_v23  ;;  %v800_v3 = vadd.f32 %v713_v34, %v526_v9 }
 0x15f   : > { %v794_v35 = vpop.f32.mrf.mxu1  ;;  %v717_v36 = vpop.f32.mrf.mxu0 }
 0x160   : > { %v803_v58 = vadd.f32 %v717_v36, %v530_v8  ;;  %v805_v10 = vadd.f32 %v794_v35, %v607_v51  ;;  %v1306_v36 = vpop.permute.xlu0 %1305 }
 0x161   : > { %v796_v2 = vpop.f32.mrf.mxu1  ;;  %v719_v39 = vpop.f32.mrf.mxu0 }
 0x162   : > { %v804_v61 = vadd.f32 %v719_v39, %v532_v54  ;;  %v806_v7 = vadd.f32 %v796_v2, %v609_v5 }
 0x166   : > { %v997_v38 = vpop.f32.mrf.mxu1 }
 0x167   : > { %v1010_v50 = vadd.f32 %v997_v38, %v801_v46 }
 0x168   : > { %v999_v40 = vpop.f32.mrf.mxu1 }
 0x169   : > { %v920_v41 = vpop.f32.mrf.mxu0  ;;  %v1011_v55 = vadd.f32 %v999_v40, %v802_v4 }
 0x16a   : > { %v1008_v56 = vadd.f32 %v920_v41, %v799_v49 }
 0x16b   : > { %v922_v43 = vpop.f32.mrf.mxu0  ;;  %v1003_v44 = vpop.f32.mrf.mxu1 }
 0x16c   : > { %v1009_v1 = vadd.f32 %v922_v43, %v800_v3  ;;  %v1014_v11 = vadd.f32 %v1003_v44, %v805_v10 }
 0x16d   : > { %v926_v47 = vpop.f32.mrf.mxu0  ;;  %v1005_v48 = vpop.f32.mrf.mxu1 }
 0x16e   : > { %v1012_v12 = vadd.f32 %v926_v47, %v803_v58  ;;  %v1015_v18 = vadd.f32 %v1005_v48, %v806_v7 }
 0x16f   : > { %v928_v52 = vpop.f32.mrf.mxu0  ;;  %v1173_v53 = vpop.f32.mrf.mxu1 }
 0x170   : > { %v1186_v57 = vadd.f32 %v1173_v53, %v1010_v50  ;;  %v1013_v19 = vadd.f32 %v928_v52, %v804_v61 }
 0x171   : > { %v1175_v59 = vpop.f32.mrf.mxu1  ;;  %v1096_v60 = vpop.f32.mrf.mxu0 }
 0x172   : > { %v1206_v62 = vadd.f32 %v1962_v33, %v1186_v57  ;;  %v1187_v63 = vadd.f32 %v1175_v59, %v1011_v55  ;;  %v1184_v0 = vadd.f32 %v1096_v60, %v1008_v56 }
 0x173   : > { %v1098_v13 = vpop.f32.mrf.mxu0  ;;  %v1179_v14 = vpop.f32.mrf.mxu1 }
 0x174   : > { %vm1290_vm12 = vcmp.gt.f32.partialorder %v1206_v62, 0.0  ;;  %v1207_v15 = vadd.f32 %v1962_v33, %v1187_v63  ;;  %v1310_v16 = vmul.f32 %v1301_v6, %v1206_v62  ;;  %v1204_v17 = vadd.f32 %v1962_v33, %v1184_v0 }
 0x175   : > { %v1185_v20 = vadd.f32 %v1098_v13, %v1009_v1  ;;  %v1190_v21 = vadd.f32 %v1179_v14, %v1014_v11  ;;  %v1102_v22 = vpop.f32.mrf.mxu0  ;;  %v1181_v24 = vpop.f32.mrf.mxu1 }
 0x176   : > { %vm1291_vm13 = vcmp.gt.f32.partialorder %v1207_v15, 0.0  ;;  %v1311_v25 = vmul.f32 %v1301_v6, %v1207_v15  ;;  %v1318_v26 = vsel %vm1290_vm12, %v1206_v62, %v1310_v16  ;;  %vm1288_vm14 = vcmp.gt.f32.partialorder %v1204_v17, 0.0 }
 0x177   : > { %1326 = vst [vmem:[%s1982_s11 + $0x10] sm:$0xff] %v1318_v26  ;;  %v1308_v27 = vmul.f32 %v1301_v6, %v1204_v17  ;;  %v1205_v28 = vadd.f32 %v1962_v33, %v1185_v20  ;;  %v1210_v29 = vadd.f32 %v1966_v37, %v1190_v21  ;;  %v1188_v30 = vadd.f32 %v1102_v22, %v1012_v12  ;;  %v1104_v31 = vpop.f32.mrf.mxu0 }
 0x178   : > { %v1319_v32 = vsel %vm1291_vm13, %v1207_v15, %v1311_v25  ;;  %v1191_v34 = vadd.f32 %v1181_v24, %v1015_v18  ;;  %v1189_v35 = vadd.f32 %v1104_v31, %v1013_v19 }
 0x179   : > { %1327 = vst [vmem:[%s1982_s11 + $0x18] sm:$0xff] %v1319_v32  ;;  %v1316_v2 = vsel %vm1288_vm14, %v1204_v17, %v1308_v27  ;;  %vm1289_vm15 = vcmp.gt.f32.partialorder %v1205_v28, 0.0  ;;  %v1309_v38 = vmul.f32 %v1301_v6, %v1205_v28  ;;  %vm1294_vm0 = vcmp.gt.f32.partialorder %v1210_v29, 0.0 }
 0x17a   : > { %1324 = vst [vmem:[%s1982_s11] sm:$0xff] %v1316_v2  ;;  %v1314_v39 = vmul.f32 %v1306_v36, %v1210_v29  ;;  %v1208_v33 = vadd.f32 %v1966_v37, %v1188_v30  ;;  %v1211_v40 = vadd.f32 %v1966_v37, %v1191_v34  ;;  %v1209_v41 = vadd.f32 %v1966_v37, %v1189_v35 }
 0x17b   : > { %v1317_v42 = vsel %vm1289_vm15, %v1205_v28, %v1309_v38 }
 0x17c   : > { %1325 = vst [vmem:[%s1982_s11 + $0x8] sm:$0xff] %v1317_v42  ;;  %v1322_v43 = vsel %vm1294_vm0, %v1210_v29, %v1314_v39  ;;  %vm1292_vm1 = vcmp.gt.f32.partialorder %v1208_v33, 0.0  ;;  %v1312_v44 = vmul.f32 %v1306_v36, %v1208_v33  ;;  %vm1295_vm2 = vcmp.gt.f32.partialorder %v1211_v40, 0.0  ;;  %1373 = sbr.rel (!%p1743_p5) target bundleno = 393 (0x189), region = 44 }
 0x17d   : > { %1330 = vst [vmem:[%s1982_s11 + $0x30] sm:$0x1f] %v1322_v43  ;;  %v1315_v45 = vmul.f32 %v1306_v36, %v1211_v40  ;;  %vm1293_vm3 = vcmp.gt.f32.partialorder %v1209_v41, 0.0  ;;  %v1313_v23 = vmul.f32 %v1306_v36, %v1209_v41 }
 0x17e   : > { %v1320_v46 = vsel %vm1292_vm1, %v1208_v33, %v1312_v44  ;;  %v1395_v4 = vld [vmem:[%s1982_s11 + $0x10] sm:$0xff] (%p1743_p5) }
 0x17f   : > { %1328 = vst [vmem:[%s1982_s11 + $0x20] sm:$0x1f] %v1320_v46  ;;  %v1323_v47 = vsel %vm1295_vm2, %v1211_v40, %v1315_v45  ;;  %v1321_v48 = vsel %vm1293_vm3, %v1209_v41, %v1313_v23  ;;  %1396 = vst [vmem:[%s1378_s16 + $0x10] sm:$0xff] (%p1743_p5), %v1395_v4 }
 0x180   : > { %1331 = vst [vmem:[%s1982_s11 + $0x38] sm:$0x1f] %v1323_v47  ;;  %1329 = vst [vmem:[%s1982_s11 + $0x28] sm:$0x1f] %v1321_v48  ;;  %v1397_v50 = vld [vmem:[%s1982_s11 + $0x18] sm:$0xff] (%p1743_p5) }
 0x181   : > { %v1391_v37 = vld [vmem:[%s1982_s11] sm:$0xff]  ;;  %1398 = vst [vmem:[%s1378_s16 + $0x18] sm:$0xff] %v1397_v50 }
 0x182   : > { %1392 = vst [vmem:[%s1378_s16] sm:$0xff] %v1391_v37 }
 0x183   : > { %v1393_v49 = vld [vmem:[%s1982_s11 + $0x8] sm:$0xff] }
 0x184   : > { %v1403_v8 = vld [vmem:[%s1982_s11 + $0x30] sm:$0xff]  ;;  %1394 = vst [vmem:[%s1378_s16 + $0x8] sm:$0xff] %v1393_v49 }
 0x185   : > { %1404 = vst [vmem:[%s1378_s16 + $0x50] sm:$0xff] %v1403_v8 }
 0x186   : > { %v1399_v9 = vld [vmem:[%s1982_s11 + $0x20] sm:$0xff] }
 0x187   : > { %v1401_v51 = vld [vmem:[%s1982_s11 + $0x28] sm:$0xff]  ;;  %v1405_v52 = vld [vmem:[%s1982_s11 + $0x38] sm:$0xff]  ;;  %1400 = vst [vmem:[%s1378_s16 + $0x40] sm:$0xff] %v1399_v9 }
 0x188   : > { %1402 = vst [vmem:[%s1378_s16 + $0x48] sm:$0xff] %v1401_v51  ;;  %1406 = vst [vmem:[%s1378_s16 + $0x58] sm:$0xff] %v1405_v52 }
 0x189 PF: > { %s15_s24 = sadd.s32 1, %s1658_s24   ;;  %s2048_s18 = smov %s1638_s19 }
 0x18a   : > { %p12_p11 = scmp.ge.s32.totalorder %s15_s24, 6   ;;  %s2049_s19 = smov %s1754_s8 }
 0x18b   : > { %s2050_s20 = smov %s1650_s22  ;;  %s2051_s21 = smov %s1654_s23 }
 0x18c   : > { %s2052_s22 = smov %s2055_s25  ;;  %s2053_s23 = smov %s2059_s26 }
 0x18d   :  { %14 = sbr.rel (!%p12_p11) target bundleno = 4 (0x4), region = 93 }

</bundles_post_ra>
